<compile_context>
chip_gen: v7x
topology: tpu7x:2x2x1
jax: 0.10.0
libtpu: 0.0.40
codegen_flags: <defaults>
</compile_context>

<pallas_src>
import jax
import jax.numpy as jnp
from jax.experimental import pallas as pl
from jax.experimental.pallas import tpu as pltpu


def _mlp_kernel(xT_ref, w1T_ref, b1_ref, w2T_ref, b2_ref, w3_ref, b3_ref, o_ref):
    xT = xT_ref[...]                                  # (3, tb)   batch on lanes
    w1T = w1T_ref[...]                                # (64, 3)   [out, in]

    # Layer 1: K=3 -> three broadcast VPU FMAs (an MXU pass would be ~97% padded).
    # w1T columns are grid-invariant lane-broadcasts; xT rows are sublane-broadcasts.
    h1 = (w1T[:, 0:1] * xT[0:1, :]
          + w1T[:, 1:2] * xT[1:2, :]
          + w1T[:, 2:3] * xT[2:3, :]
          + b1_ref[...])                              # (64, tb)
    h1 = jnp.maximum(h1, 0.0)

    # Layer 2: (64,64) x (64,tb) MXU matmul — batch on the wide N axis.
    # Precision pinned so the f32 contraction is not lowered to a single bf16 pass.
    h2 = jax.lax.dot_general(
        w2T_ref[...], h1,
        dimension_numbers=(((1,), (0,)), ((), ())),
        precision=jax.lax.Precision.HIGHEST,
        preferred_element_type=jnp.float32)           # (64, tb)
    h2 = jnp.maximum(h2 + b2_ref[...], 0.0)

    # Layer 3 (64 -> 1): VPU multiply + sublane (XLU) reduce; lane-dense (1, tb) store.
    o = jnp.sum(h2 * w3_ref[...], axis=0, keepdims=True) + b3_ref[...]
    o_ref[...] = o.astype(o_ref.dtype)                # (1, tb)


def _round_up(n, m):
    return ((n + m - 1) // m) * m


def simple_net_forward(x, params, *, tile_b=4096):
    """x: (B, 3) float32. params: w1,b1,w2,b2,w3,b3 in Linear layout [in, out] / [1, out]."""
    w1, b1, w2, b2, w3, b3 = (params[k] for k in ("w1", "b1", "w2", "b2", "w3", "b3"))
    B, F = x.shape
    assert F == 3, F

    LANE = 128
    # Grid sizing: cover B with <= ~tile_b rows/step; keep >= 2 steps (when B is
    # big enough) so v7x megacore can shard the "parallel" axis across both TCs.
    num_tiles = max(1, pl.cdiv(B, tile_b))
    if num_tiles == 1 and B > LANE:
        num_tiles = 2
    tb = _round_up(pl.cdiv(B, num_tiles), LANE)       # batch tile, lane-aligned
    B_pad = num_tiles * tb

    # Transposed ("batch on lanes") operand layout.
    xT = jnp.pad(x.T, ((0, 0), (0, B_pad - B)))       # (3, B_pad)
    w1T = w1.T                                        # (64, 3)
    b1c = b1.reshape(64, 1)
    w2T = w2.T                                        # (64, 64) [out, in]
    b2c = b2.reshape(64, 1)
    w3c = w3.reshape(64, 1)
    b3c = b3.reshape(1, 1)

    # VMEM budget from the real (8,128)-padded footprint:
    #  - xT block (3->8 sublanes, tb) and out block (1->8, tb), double-buffered,
    #  - ~4 live (64, tb) f32 temporaries (h1, h2, layer-1/3 products),
    #  - weights/biases pad to (>=8, >=128) tiles, double-buffered,
    #  - + 2 MiB headroom for Mosaic internal scratch. Capped under scoped defaults.
    weight_bytes = 2 * 4 * (5 * 64 * 128 + 8 * 128)
    per_row_bytes = 4 * (2 * 8 + 2 * 8 + 4 * 64)
    vmem_limit = min(max(weight_bytes + per_row_bytes * tb + (2 << 20), 4 << 20),
                     32 << 20)

    full = lambda a: pl.BlockSpec(a.shape, lambda i: (0,) * a.ndim)

    out = pl.pallas_call(
        _mlp_kernel,
        out_shape=jax.ShapeDtypeStruct((1, B_pad), jnp.float32),
        grid=(num_tiles,),
        in_specs=[
            pl.BlockSpec((3, tb), lambda i: (0, i)),   # xT: streamed batch tiles
            full(w1T), full(b1c), full(w2T), full(b2c),  # weights: VMEM-resident
            full(w3c), full(b3c),
        ],
        out_specs=pl.BlockSpec((1, tb), lambda i: (0, i)),  # lane-dense output slab
        compiler_params=pltpu.CompilerParams(
            dimension_semantics=("parallel",),          # megacore sharding on v7x
            vmem_limit_bytes=int(vmem_limit),
        ),
    )(xT, w1T, b1c, w2T, b2c, w3c, b3c)

    # Layout plumbing back to the module's (B, 1) output.
    return out.reshape(-1, 1)[:B]


def init_params(key):
    """Deterministic init mimicking nn.Linear defaults: U(-1/sqrt(fan_in), 1/sqrt(fan_in))."""
    dims = [(3, 64), (64, 64), (64, 1)]
    params = {}
    for idx, (fan_in, fan_out) in enumerate(dims, start=1):
        key, kw, kb = jax.random.split(key, 3)
        bound = 1.0 / jnp.sqrt(float(fan_in))
        params[f"w{idx}"] = jax.random.uniform(
            kw, (fan_in, fan_out), jnp.float32, -bound, bound)
        params[f"b{idx}"] = jax.random.uniform(
            kb, (1, fan_out), jnp.float32, -bound, bound)
    return params


def reference_forward(x, params):
    hp = jax.lax.Precision.HIGHEST
    h1 = jnp.maximum(jnp.dot(x, params["w1"], precision=hp) + params["b1"], 0.0)
    h2 = jnp.maximum(jnp.dot(h1, params["w2"], precision=hp) + params["b2"], 0.0)
    return jnp.dot(h2, params["w3"], precision=hp) + params["b3"]


if __name__ == "__main__":
    key = jax.random.PRNGKey(0)
    key, kx, kx2 = jax.random.split(key, 3)
    params = init_params(key)

    # Small-shape check (single 128-lane tile, padded batch rows sliced off).
    batch = 8
    x = jax.random.normal(kx, (batch, 3), jnp.float32)
    out = jax.block_until_ready(simple_net_forward(x, params))
    ref = reference_forward(x, params)
    assert out.shape == (batch, 1), out.shape
    assert jnp.allclose(out, ref, atol=1e-5, rtol=1e-5), "mismatch vs JAX reference (small)"

    # Multi-tile check: exercises the batch grid + ragged padding path.
    batch2 = 1037
    x2 = jax.random.normal(kx2, (batch2, 3), jnp.float32)
    out2 = jax.block_until_ready(simple_net_forward(x2, params, tile_b=512))
    ref2 = reference_forward(x2, params)
    assert out2.shape == (batch2, 1), out2.shape
    assert jnp.allclose(out2, ref2, atol=1e-5, rtol=1e-5), "mismatch vs JAX reference (tiled)"

    print("KERNEL_OK")
</pallas_src>

<mosaic_0001>
module attributes {stable_mosaic.version = 11 : i64} {
  func.func @_mlp_kernel(%arg0: i32, %arg1: memref<3x128xf32, #tpu.memory_space<vmem>>, %arg2: memref<64x3xf32, #tpu.memory_space<vmem>>, %arg3: memref<64x1xf32, #tpu.memory_space<vmem>>, %arg4: memref<64x64xf32, #tpu.memory_space<vmem>>, %arg5: memref<64x1xf32, #tpu.memory_space<vmem>>, %arg6: memref<64x1xf32, #tpu.memory_space<vmem>>, %arg7: memref<1x1xf32, #tpu.memory_space<vmem>>, %arg8: memref<1x128xf32, #tpu.memory_space<vmem>>) attributes {dimension_semantics = [#tpu.dimension_semantics<parallel>], iteration_bounds = array<i64: 1>, scalar_prefetch = 0 : i64, scratch_operands = 0 : i64, tpu.core_type = #tpu.core_type<tc>, window_params = [{transform_indices = @transform_0, window_bounds = array<i64: 3, 128>}, {pipeline_mode = #tpu.pipeline_mode<synchronous>, transform_indices = @transform_1, window_bounds = array<i64: 64, 3>}, {pipeline_mode = #tpu.pipeline_mode<synchronous>, transform_indices = @transform_2, window_bounds = array<i64: 64, 1>}, {pipeline_mode = #tpu.pipeline_mode<synchronous>, transform_indices = @transform_3, window_bounds = array<i64: 64, 64>}, {pipeline_mode = #tpu.pipeline_mode<synchronous>, transform_indices = @transform_4, window_bounds = array<i64: 64, 1>}, {pipeline_mode = #tpu.pipeline_mode<synchronous>, transform_indices = @transform_5, window_bounds = array<i64: 64, 1>}, {pipeline_mode = #tpu.pipeline_mode<synchronous>, transform_indices = @transform_6, window_bounds = array<i64: 1, 1>}, {transform_indices = @transform_7, window_bounds = array<i64: 1, 128>}]} {
    %c0 = arith.constant 0 : index
    %c0_0 = arith.constant 0 : index
    %0 = vector.load %arg1[%c0, %c0_0] : memref<3x128xf32, #tpu.memory_space<vmem>>, vector<3x128xf32>
    %c0_1 = arith.constant 0 : index
    %c0_2 = arith.constant 0 : index
    %1 = vector.load %arg2[%c0_1, %c0_2] : memref<64x3xf32, #tpu.memory_space<vmem>>, vector<64x3xf32>
    %2 = vector.extract_strided_slice %1 {offsets = [0, 0], sizes = [64, 1], strides = [1, 1]} : vector<64x3xf32> to vector<64x1xf32>
    %3 = vector.extract_strided_slice %0 {offsets = [0, 0], sizes = [1, 128], strides = [1, 1]} : vector<3x128xf32> to vector<1x128xf32>
    %4 = vector.broadcast %2 : vector<64x1xf32> to vector<64x128xf32>
    %5 = vector.broadcast %3 : vector<1x128xf32> to vector<64x128xf32>
    %6 = arith.mulf %4, %5 : vector<64x128xf32>
    %7 = vector.extract_strided_slice %1 {offsets = [0, 1], sizes = [64, 1], strides = [1, 1]} : vector<64x3xf32> to vector<64x1xf32>
    %8 = vector.extract_strided_slice %0 {offsets = [1, 0], sizes = [1, 128], strides = [1, 1]} : vector<3x128xf32> to vector<1x128xf32>
    %9 = vector.broadcast %7 : vector<64x1xf32> to vector<64x128xf32>
    %10 = vector.broadcast %8 : vector<1x128xf32> to vector<64x128xf32>
    %11 = arith.mulf %9, %10 : vector<64x128xf32>
    %12 = arith.addf %6, %11 : vector<64x128xf32>
    %13 = vector.extract_strided_slice %1 {offsets = [0, 2], sizes = [64, 1], strides = [1, 1]} : vector<64x3xf32> to vector<64x1xf32>
    %14 = vector.extract_strided_slice %0 {offsets = [2, 0], sizes = [1, 128], strides = [1, 1]} : vector<3x128xf32> to vector<1x128xf32>
    %15 = vector.broadcast %13 : vector<64x1xf32> to vector<64x128xf32>
    %16 = vector.broadcast %14 : vector<1x128xf32> to vector<64x128xf32>
    %17 = arith.mulf %15, %16 : vector<64x128xf32>
    %18 = arith.addf %12, %17 : vector<64x128xf32>
    %c0_3 = arith.constant 0 : index
    %c0_4 = arith.constant 0 : index
    %19 = vector.load %arg3[%c0_3, %c0_4] : memref<64x1xf32, #tpu.memory_space<vmem>>, vector<64x1xf32>
    %20 = vector.broadcast %19 : vector<64x1xf32> to vector<64x128xf32>
    %21 = arith.addf %18, %20 : vector<64x128xf32>
    %cst = arith.constant 0.000000e+00 : f32
    %22 = vector.broadcast %cst : f32 to vector<64x128xf32>
    %23 = arith.maximumf %21, %22 : vector<64x128xf32>
    %c0_5 = arith.constant 0 : index
    %c0_6 = arith.constant 0 : index
    %24 = vector.load %arg4[%c0_5, %c0_6] : memref<64x64xf32, #tpu.memory_space<vmem>>, vector<64x64xf32>
    %cst_7 = arith.constant dense<0.000000e+00> : vector<64x128xf32>
    %25 = tpu.matmul %24, %23, %cst_7 {dimension_numbers = #tpu.dot_dimension_numbers<[1], [0], [0], [1], [0, 0, 1, 1], [], []>, precision = #tpu.contract_precision<fp32>} : vector<64x64xf32>, vector<64x128xf32>, vector<64x128xf32> -> vector<64x128xf32>
    %c0_8 = arith.constant 0 : index
    %c0_9 = arith.constant 0 : index
    %26 = vector.load %arg5[%c0_8, %c0_9] : memref<64x1xf32, #tpu.memory_space<vmem>>, vector<64x1xf32>
    %27 = vector.broadcast %26 : vector<64x1xf32> to vector<64x128xf32>
    %28 = arith.addf %25, %27 : vector<64x128xf32>
    %cst_10 = arith.constant 0.000000e+00 : f32
    %29 = vector.broadcast %cst_10 : f32 to vector<64x128xf32>
    %30 = arith.maximumf %28, %29 : vector<64x128xf32>
    %c0_11 = arith.constant 0 : index
    %c0_12 = arith.constant 0 : index
    %31 = vector.load %arg6[%c0_11, %c0_12] : memref<64x1xf32, #tpu.memory_space<vmem>>, vector<64x1xf32>
    %32 = vector.broadcast %31 : vector<64x1xf32> to vector<64x128xf32>
    %33 = arith.mulf %30, %32 : vector<64x128xf32>
    %cst_13 = arith.constant dense<0.000000e+00> : vector<128xf32>
    %34 = vector.multi_reduction <add>, %33, %cst_13 [0] : vector<64x128xf32> to vector<128xf32>
    %35 = vector.shape_cast %34 : vector<128xf32> to vector<1x128xf32>
    %c0_14 = arith.constant 0 : index
    %c0_15 = arith.constant 0 : index
    %36 = vector.load %arg7[%c0_14, %c0_15] : memref<1x1xf32, #tpu.memory_space<vmem>>, vector<1x1xf32>
    %37 = vector.broadcast %36 : vector<1x1xf32> to vector<1x128xf32>
    %38 = arith.addf %35, %37 : vector<1x128xf32>
    %c0_16 = arith.constant 0 : index
    %c0_17 = arith.constant 0 : index
    %39 = vector.load %arg8[%c0_16, %c0_17] : memref<1x128xf32, #tpu.memory_space<vmem>>, vector<1x128xf32>
    tpu.vector_store %arg8[%c0_16, %c0_17], %38 {strides = array<i32>} : memref<1x128xf32, #tpu.memory_space<vmem>>, vector<1x128xf32>,
    return
  }
  func.func @transform_0(%arg0: i32) -> (i32, i32) {
    %c0_i32 = arith.constant 0 : i32
    %c0_i32_0 = arith.constant 0 : i32
    return %c0_i32, %arg0 : i32, i32
  }
  func.func @transform_1(%arg0: i32) -> (i32, i32) {
    %c0_i32 = arith.constant 0 : i32
    %c0_i32_0 = arith.constant 0 : i32
    %c0_i32_1 = arith.constant 0 : i32
    return %c0_i32, %c0_i32_0 : i32, i32
  }
  func.func @transform_2(%arg0: i32) -> (i32, i32) {
    %c0_i32 = arith.constant 0 : i32
    %c0_i32_0 = arith.constant 0 : i32
    %c0_i32_1 = arith.constant 0 : i32
    return %c0_i32, %c0_i32_0 : i32, i32
  }
  func.func @transform_3(%arg0: i32) -> (i32, i32) {
    %c0_i32 = arith.constant 0 : i32
    %c0_i32_0 = arith.constant 0 : i32
    %c0_i32_1 = arith.constant 0 : i32
    return %c0_i32, %c0_i32_0 : i32, i32
  }
  func.func @transform_4(%arg0: i32) -> (i32, i32) {
    %c0_i32 = arith.constant 0 : i32
    %c0_i32_0 = arith.constant 0 : i32
    %c0_i32_1 = arith.constant 0 : i32
    return %c0_i32, %c0_i32_0 : i32, i32
  }
  func.func @transform_5(%arg0: i32) -> (i32, i32) {
    %c0_i32 = arith.constant 0 : i32
    %c0_i32_0 = arith.constant 0 : i32
    %c0_i32_1 = arith.constant 0 : i32
    return %c0_i32, %c0_i32_0 : i32, i32
  }
  func.func @transform_6(%arg0: i32) -> (i32, i32) {
    %c0_i32 = arith.constant 0 : i32
    %c0_i32_0 = arith.constant 0 : i32
    %c0_i32_1 = arith.constant 0 : i32
    return %c0_i32, %c0_i32_0 : i32, i32
  }
  func.func @transform_7(%arg0: i32) -> (i32, i32) {
    %c0_i32 = arith.constant 0 : i32
    %c0_i32_0 = arith.constant 0 : i32
    return %c0_i32, %arg0 : i32, i32
  }
}

</mosaic_0001>

<bundles_post_ra>
// kernel: tpu_custom_call.1
= control target key start
LH: loop header
LB: loop body
LE: loop exit
PB: predicated region body
PF: predicated region fallthrough
CT: control target
= control target key end

     0   :  { %s2179_s0 = inlined_call_operand.vmem [shape: f32[3,128], index: 0, kind: input, shape index: {}]   ;;  %s2180_s1 = inlined_call_operand.vmem [shape: f32[64,3], index: 1, kind: input, shape index: {}]   ;;  %s2181_s2 = inlined_call_operand.vmem [shape: f32[64,1], index: 2, kind: input, shape index: {}]   ;;  %s2182_s3 = inlined_call_operand.vmem [shape: f32[64,64], index: 3, kind: input, shape index: {}]   ;;  %s2183_s4 = inlined_call_operand.vmem [shape: f32[64,1], index: 4, kind: input, shape index: {}]   ;;  %s2184_s5 = inlined_call_operand.vmem [shape: f32[64,1], index: 5, kind: input, shape index: {}]   ;;  %s2185_s6 = inlined_call_operand.<no memory space> [shape: f32[1,1], index: 6, kind: input, shape index: {}]   ;;  %s2186_s7 = inlined_call_operand.hbm [shape: f32[1,128], index: 7, kind: output, shape index: {}]  }
   0x1   :  { %v12_v0 = vstv %s2185_s6 }
   0x2   :  { %13 = vst [vmem:[#allocation2] sm:$0x1] %v12_v0 }
   0x3   :  { %v30_v1 = vld [vmem:[%s2180_s1] sm:$0xff]  ;;  %v1731_v2 = vmov 2   ;;  %v1732_v3 = vmov 1   ;;  %v32_v4 = vld [vmem:[%s2180_s1 + $0x10] sm:$0xff]  ;;  %v31_v5 = vld [vmem:[%s2180_s1 + $0x8] sm:$0xff] }
   0x4   :  { %1693 = vset.pattern.permute.xlu0 %v1731_v2  ;;  %1692 = vset.pattern.permute.xlu1 %v1732_v3  ;;  %v35_v6 = vld [vmem:[%s2180_s1 + $0x28] sm:$0xff] }
   0x5   :  { %143 = vperm.xlu0 %1693, %v30_v1   ;;  %91 = vperm.xlu1 %1692, %v30_v1  }
   0x9   :  { %151 = vperm.xlu0 %1693, %v32_v4   ;;  %95 = vperm.xlu1 %1692, %v31_v5  }
   0xd   :  { %163 = vperm.xlu0 %1693, %v35_v6   ;;  %1694 = vset.pattern.permute.xlu1 %v1731_v2 }
   0xe   :  { %147 = vperm.xlu1 %1694, %v31_v5  }
   0xf   :  { %14 = vsyncpa [#allocation4], 0  ;;  %v34_v7 = vld [vmem:[%s2180_s1 + $0x20] sm:$0xff]  ;;  %v1733_v8 = vmov 0   ;;  %v37_v9 = vld [vmem:[%s2180_s1 + $0x38] sm:$0xff]  ;;  %vm314_vm0 = vcmask 523264   ;;  %v78_v50 = vlaneseq }
  0x10   :  { %v33_v10 = vld [vmem:[%s2180_s1 + $0x18] sm:$0xff]  ;;  %v194_v11 = vld [vmem:[%s2181_s2] sm:$0xff]  ;;  %v195_v12 = vld [vmem:[%s2181_s2 + $0x8] sm:$0xff] }
  0x11   :  { %1701 = vset.pattern.permute.xlu0 %v1732_v3  ;;  %v36_v13 = vld [vmem:[%s2180_s1 + $0x30] sm:$0xff]  ;;  %v198_v14 = vld [vmem:[%s2181_s2 + $0x20] sm:$0xff]  ;;  %v201_v15 = vld [vmem:[%s2181_s2 + $0x38] sm:$0xff]  ;;  %v1899_v52 = vshrl.u32 %v78_v50, 7 }
  0x12   :  { %107 = vperm.xlu0 %1701, %v34_v7   ;;  %1695 = vset.pattern.permute.xlu1 %v1733_v8  ;;  %v267_v16 = vld [vmem:[%s2183_s4 + $0x8] sm:$0xff]  ;;  %v269_v17 = vld [vmem:[%s2183_s4 + $0x18] sm:$0xff]  ;;  %v196_v18 = vld [vmem:[%s2181_s2 + $0x10] sm:$0xff] }
  0x13   :  { %50 = vperm.xlu1 %1695, %v32_v4   ;;  %v1185_v19 = vld [vmem:[%s2184_s5] sm:$0xff]  ;;  %v197_v20 = vld [vmem:[%s2181_s2 + $0x18] sm:$0xff]  ;;  %v271_v21 = vld [vmem:[%s2183_s4 + $0x28] sm:$0xff]  ;;  %v124_v55 = vsub.s32 1, %v1899_v52  ;;  %v80_v56 = vsub.s32 0, %v1899_v52  ;;  %v176_v60 = vsub.s32 2, %v1899_v52 }
  0x14   :  { %v272_v22 = vld [vmem:[%s2183_s4 + $0x30] sm:$0xff]  ;;  %v273_v23 = vld [vmem:[%s2183_s4 + $0x38] sm:$0xff]  ;;  %v1190_v24 = vld [vmem:[%s2184_s5 + $0x28] sm:$0xff] }
  0x15   :  { %v1192_v25 = vld [vmem:[%s2184_s5 + $0x38] sm:$0xff]  ;;  %v199_v26 = vld [vmem:[%s2181_s2 + $0x28] sm:$0xff]  ;;  %v200_v27 = vld [vmem:[%s2181_s2 + $0x30] sm:$0xff] }
  0x16   :  { %119 = vperm.xlu0 %1701, %v37_v9   ;;  %v258_v28 = vld [vmem:[%s2182_s3] sm:$0xff]  ;;  %v268_v33 = vld [vmem:[%s2183_s4 + $0x10] sm:$0xff]  ;;  %v1186_v38 = vld [vmem:[%s2184_s5 + $0x8] sm:$0xff] }
  0x17   :  { %1696 = vset.pattern.permute.xlu1 %v1732_v3  ;;  %v316_v29 = vsel %vm314_vm0, %v258_v28, 0  ;;  %v266_v30 = vld [vmem:[%s2183_s4] sm:$0xff]  ;;  %v1187_v39 = vld [vmem:[%s2184_s5 + $0x10] sm:$0xff]  ;;  %v1188_v40 = vld [vmem:[%s2184_s5 + $0x18] sm:$0xff] }
  0x18   :  { %99 = vperm.xlu1 %1696, %v32_v4   ;;  %v1867_v31 = vand.u32 4294901760, %v316_v29  ;;  %v270_v36 = vld [vmem:[%s2183_s4 + $0x20] sm:$0xff]  ;;  %v1191_v42 = vld [vmem:[%s2184_s5 + $0x30] sm:$0xff] }
  0x19   :  { %v1189_v41 = vld [vmem:[%s2184_s5 + $0x20] sm:$0xff] }
  0x1a   :  { %1704 = vset.pattern.permute.xlu0 %v1733_v8  ;;  %v1870_v32 = vsub.f32 %v316_v29, %v1867_v31  ;;  %v1254_v43 = vld [vmem:[#allocation2] sm:$0x1] }
  0x1b   :  { %40 = vperm.xlu0 %1704, %v30_v1   ;;  %v29_v57 = vld [vmem:[%s2179_s0] sm:$0x7] }
  0x1c   :  { %103 = vperm.xlu1 %1696, %v33_v10   ;;  %v414_v34 = vand.u32 4294901760, %v1870_v32  ;;  %v1908_v59 = vrot.slane %v29_v57, %v124_v55  ;;  %v1913_v61 = vrot.slane %v29_v57, %v80_v56 }
  0x1e   :  { %v415_v35 = vsub.f32 %v1870_v32, %v414_v34  ;;  %1476 = vmatprep.mubr.f32.mxu0 %v414_v34 }
  0x1f   :  { %45 = vperm.xlu0 %1704, %v31_v5  }
  0x20   :  { %1697 = vset.pattern.permute.xlu1 %v1731_v2  ;;  %v416_v37 = vand.u32 4294901760, %v415_v35 }
  0x21   :  { %155 = vperm.xlu1 %1697, %v33_v10  }
  0x22   :  { %1392 = vmatprep.mubr.f32.mxu1 %v416_v37 }
  0x23   :  { %55 = vperm.xlu0 %1704, %v33_v10  }
  0x25   :  { %1698 = vset.pattern.permute.xlu1 %v1733_v8 }
  0x26   :  { %204 = vperm.xlu1 %1698, %v194_v11  }
  0x27   :  { %209 = vperm.xlu0 %1704, %v195_v12  }
  0x2a   :  { %60 = vperm.xlu1 %1698, %v34_v7  }
  0x2b   :  { %70 = vperm.xlu0 %1704, %v36_v13  }
  0x2e   :  { %65 = vperm.xlu1 %1698, %v35_v6  }
  0x2f   :  { %224 = vperm.xlu0 %1704, %v198_v14  }
  0x32   :  { %1699 = vset.pattern.permute.xlu1 %v1732_v3 }
  0x33   :  { %239 = vperm.xlu0 %1704, %v201_v15   ;;  %111 = vperm.xlu1 %1699, %v35_v6  }
  0x37   :  { %281 = vperm.xlu0 %1704, %v267_v16   ;;  %1700 = vset.pattern.permute.xlu1 %v1731_v2 }
  0x38   :  { %159 = vperm.xlu1 %1700, %v34_v7  }
  0x3b   :  { %291 = vperm.xlu0 %1704, %v269_v17  }
  0x3c   :  { %1702 = vset.pattern.permute.xlu1 %v1733_v8 }
  0x3d   :  { %214 = vperm.xlu1 %1702, %v196_v18  }
  0x3f   :  { %1195 = vperm.xlu0 %1704, %v1185_v19  }
  0x41   :  { %219 = vperm.xlu1 %1702, %v197_v20  }
  0x43   :  { %301 = vperm.xlu0 %1704, %v271_v21  }
  0x45   :  { %75 = vperm.xlu1 %1702, %v37_v9  }
  0x47   :  { %306 = vperm.xlu0 %1704, %v272_v22  }
  0x49   :  { %1703 = vset.pattern.permute.xlu1 %v1732_v3 }
  0x4a   :  { %115 = vperm.xlu1 %1703, %v36_v13  }
  0x4b   :  { %311 = vperm.xlu0 %1704, %v273_v23  }
  0x4e   :  { %1705 = vset.pattern.permute.xlu1 %v1731_v2  ;;  %v1917_v2 = vrot.slane %v29_v57, %v176_v60 }
  0x4f   :  { %1220 = vperm.xlu0 %1704, %v1190_v24   ;;  %167 = vperm.xlu1 %1705, %v36_v13  }
  0x53   :  { %1230 = vperm.xlu0 %1704, %v1192_v25   ;;  %171 = vperm.xlu1 %1705, %v37_v9  }
  0x57   :  { %1706 = vset.pattern.permute.xlu1 %v1733_v8 }
  0x58   :  { %229 = vperm.xlu1 %1706, %v199_v26  }
  0x5c   :  { %234 = vperm.xlu1 %1706, %v200_v27  }
  0x60   :  { %276 = vperm.xlu1 %1706, %v266_v30  }
  0x64   :  { %286 = vperm.xlu1 %1706, %v268_v33  }
  0x68   :  { %296 = vperm.xlu1 %1706, %v270_v36  }
  0x6c   :  { %1200 = vperm.xlu1 %1706, %v1186_v38  }
  0x70   :  { %1205 = vperm.xlu1 %1706, %v1187_v39  }
  0x74   :  { %1210 = vperm.xlu1 %1706, %v1188_v40  }
  0x78   :  { %1215 = vperm.xlu1 %1706, %v1189_v41  }
  0x7c   :  { %1225 = vperm.xlu1 %1706, %v1191_v42  }
  0x80   :  { %1257 = vperm.xlu1 %1706, %v1254_v43  }
  0x84   :  { %v92_v44 = vpop.permute.xlu1 %91  ;;  %v144_v45 = vpop.permute.xlu0 %143 }
  0x85   :  { %v126_v1 = vmul.f32 %v1908_v59, %v92_v44  ;;  %v178_v6 = vmul.f32 %v1917_v2, %v144_v45  ;;  %v259_v45 = vld [vmem:[%s2182_s3 + $0x8] sm:$0xff] }
  0x86   :  { %v319_v50 = vsel %vm314_vm0, %v259_v45, 0 }
  0x88   :  { %v96_v46 = vpop.permute.xlu1 %95  ;;  %v152_v47 = vpop.permute.xlu0 %151 }
  0x89   :  { %v127_v4 = vmul.f32 %v1908_v59, %v96_v46  ;;  %v180_v28 = vmul.f32 %v1917_v2, %v152_v47 }
  0x8c   :  { %v1895_v48 = vpop.permute.xlu0 %163 }
  0x8d   :  { %v148_v49 = vpop.permute.xlu1 %147 }
  0x8e   :  { %v179_v11 = vmul.f32 %v1917_v2, %v148_v49 }
  0x91   :  { %v1897_v51 = vpop.permute.xlu0 %107 }
  0x92   :  { %v51_v53 = vpop.permute.xlu1 %50 }
  0x93   :  { %v84_v27 = vmul.f32 %v1913_v61, %v51_v53  ;;  %v130_v53 = vmul.f32 %v1908_v59, %v1897_v51  ;;  %v260_v51 = vld [vmem:[%s2182_s3 + $0x10] sm:$0xff] }
  0x95   :  { %v1901_v54 = vpop.permute.xlu0 %119 }
  0x97   :  { %v100_v58 = vpop.permute.xlu1 %99 }
  0x98   :  { %v128_v26 = vmul.f32 %v1908_v59, %v100_v58 }
  0x9a   :  { %v41_v62 = vpop.permute.xlu0 %40  ;;  %v136_v29 = vadd.f32 %v128_v26, %v84_v27 }
  0x9b   :  { %v104_v63 = vpop.permute.xlu1 %103  ;;  %v82_v0 = vmul.f32 %v1913_v61, %v41_v62  ;;  %v1965_v62 = vand.u32 4294901760, %v319_v50 }
  0x9c   :  { %v129_v34 = vmul.f32 %v1908_v59, %v104_v63  ;;  %v188_v36 = vadd.f32 %v180_v28, %v136_v29  ;;  %v183_v29 = vmul.f32 %v1917_v2, %v1895_v48 }
  0x9d   :  { %v134_v7 = vadd.f32 %v126_v1, %v82_v0 }
  0x9e   :  { %v46_v3 = vpop.permute.xlu0 %45 }
  0x9f   :  { %v83_v5 = vmul.f32 %v1913_v61, %v46_v3  ;;  %v186_v12 = vadd.f32 %v178_v6, %v134_v7  ;;  %v1973_v3 = vsub.f32 %v319_v50, %v1965_v62  ;;  %v322_v7 = vsel %vm314_vm0, %v260_v51, 0  ;;  %v265_v50 = vld [vmem:[%s2182_s3 + $0x38] sm:$0xff] }
  0xa0   :  { %v156_v8 = vpop.permute.xlu1 %155 }
  0xa1   :  { %v135_v9 = vadd.f32 %v127_v4, %v83_v5  ;;  %v181_v38 = vmul.f32 %v1917_v2, %v156_v8  ;;  %v261_v4 = vld [vmem:[%s2182_s3 + $0x18] sm:$0xff] }
  0xa2   :  { %v56_v10 = vpop.permute.xlu0 %55 }
  0xa3   :  { %v187_v14 = vadd.f32 %v179_v11, %v135_v9  ;;  %v85_v30 = vmul.f32 %v1913_v61, %v56_v10  ;;  %v325_v11 = vsel %vm314_vm0, %v261_v4, 0 }
  0xa4   :  { %v1993_v28 = vand.u32 4294901760, %v325_v11 }
  0xa5   :  { %v205_v13 = vpop.permute.xlu1 %204  ;;  %v137_v35 = vadd.f32 %v129_v34, %v85_v30 }
  0xa6   :  { %v1923_v15 = vadd.f32 %v205_v13, %v186_v12  ;;  %v210_v16 = vpop.permute.xlu0 %209  ;;  %v133_v12 = vmul.f32 %v1908_v59, %v1901_v54  ;;  %v262_v54 = vld [vmem:[%s2182_s3 + $0x20] sm:$0xff] }
  0xa7   :  { %v1925_v17 = vadd.f32 %v210_v16, %v187_v14  ;;  %v189_v40 = vadd.f32 %v181_v38, %v137_v35  ;;  %v424_v14 = vand.u32 4294901760, %v1973_v3  ;;  %v1986_v16 = vand.u32 4294901760, %v322_v7 }
  0xa8   :  { %v250_v18 = vmax.f32 %v1923_v15, 0.0  ;;  %v328_v35 = vsel %vm314_vm0, %v262_v54, 0 }
  0xa9   :  { %v251_v19 = vmax.f32 %v1925_v17, 0.0  ;;  %v61_v20 = vpop.permute.xlu1 %60  ;;  %v2012_v34 = vsub.f32 %v1973_v3, %v424_v14  ;;  %v2015_v48 = vsub.f32 %v322_v7, %v1986_v16 }
  0xaa   :  { %v340_v21 = vand.u32 4294901760, %v250_v18  ;;  %v86_v55 = vmul.f32 %v1913_v61, %v61_v20  ;;  %v71_v63 = vpop.permute.xlu0 %70 }
  0xab   :  { %v1933_v22 = vand.u32 4294901760, %v251_v19  ;;  %v88_v17 = vmul.f32 %v1913_v61, %v71_v63 }
  0xac   :  { %v138_v0 = vadd.f32 %v130_v53, %v86_v55  ;;  %v1990_v26 = vsub.f32 %v250_v18, %v340_v21  ;;  %v263_v18 = vld [vmem:[%s2182_s3 + $0x28] sm:$0xff] }
  0xad   :  { %v1936_v23 = vpack.c.bf16 %v1933_v22, %v340_v21  ;;  %v66_v24 = vpop.permute.xlu1 %65  ;;  %v2003_v30 = vsub.f32 %v251_v19, %v1933_v22 }
  0xae   :  { %v87_v9 = vmul.f32 %v1913_v61, %v66_v24  ;;  %v225_v10 = vpop.permute.xlu0 %224 }
  0xaf   :  { %1545 = vmatprep.subr.bf16.mxu1 %v1936_v23  ;;  %1593 = vmatprep.subr.bf16.mxu0 %v1936_v23 }
  0xb0   :  { %1547 = vmatpush3.bf16.msra.mxu1 %v1936_v23  ;;  %1595 = vmatpush3.bf16.msra.mxu0 %v1936_v23 }
  0xb2   :  { %v112_v25 = vpop.permute.xlu1 %111  ;;  %v240_v19 = vpop.permute.xlu0 %239 }
  0xb3   :  { %v131_v5 = vmul.f32 %v1908_v59, %v112_v25 }
  0xb5   :  { %v139_v20 = vadd.f32 %v131_v5, %v87_v9 }
  0xb7   :  { %v160_v33 = vpop.permute.xlu1 %159 }
  0xb8   :  { %v182_v58 = vmul.f32 %v1917_v2, %v160_v33 }
  0xba   :  { %v190_v1 = vadd.f32 %v182_v58, %v138_v0  ;;  %v434_v58 = vand.u32 4294901760, %v2015_v48  ;;  %v426_v0 = vand.u32 4294901760, %v2012_v34 }
  0xbc   :  { %v215_v37 = vpop.permute.xlu1 %214  ;;  %v246_v13 = vadd.f32 %v225_v10, %v190_v1  ;;  %v435_v34 = vsub.f32 %v2015_v48, %v434_v58 }
  0xbd   :  { %v1948_v39 = vadd.f32 %v215_v37, %v188_v36  ;;  %v495_v36 = vand.u32 4294901760, %v1990_v26 }
  0xbe   :  { %v254_v21 = vmax.f32 %v246_v13, 0.0 }
  0xbf   :  { %v252_v42 = vmax.f32 %v1948_v39, 0.0  ;;  %v496_v1 = vsub.f32 %v1990_v26, %v495_v36  ;;  %v337_v39 = vsel %vm314_vm0, %v265_v50, 0 }
  0xc0   :  { %v220_v41 = vpop.permute.xlu1 %219  ;;  %v352_v53 = vand.u32 4294901760, %v254_v21 }
  0xc1   :  { %v245_v43 = vadd.f32 %v220_v41, %v189_v40  ;;  %v346_v47 = vand.u32 4294901760, %v252_v42  ;;  %v2022_v40 = vsub.f32 %v325_v11, %v1993_v28  ;;  %v331_v41 = vsel %vm314_vm0, %v263_v18, 0 }
  0xc2   :  { %v2043_v4 = vand.u32 4294901760, %v331_v41 }
  0xc3   :  { %v253_v44 = vmax.f32 %v245_v43, 0.0  ;;  %v502_v43 = vand.u32 4294901760, %v2003_v30  ;;  %v2036_v55 = vsub.f32 %v252_v42, %v346_v47  ;;  %v444_v10 = vand.u32 4294901760, %v2022_v40 }
  0xc4   :  { %v76_v46 = vpop.permute.xlu1 %75 }
  0xc5   :  { %v349_v49 = vand.u32 4294901760, %v253_v44  ;;  %v89_v8 = vmul.f32 %v1913_v61, %v76_v46  ;;  %v503_v7 = vsub.f32 %v2003_v30, %v502_v43  ;;  %v509_v9 = vand.u32 4294901760, %v2036_v55 }
  0xc7   :  { %v1960_v57 = vpack.c.bf16 %v349_v49, %v346_v47  ;;  %v141_v27 = vadd.f32 %v133_v12, %v89_v8  ;;  %v2026_v45 = vsub.f32 %v253_v44, %v349_v49  ;;  %v2049_v8 = vsub.f32 %v254_v21, %v352_v53 }
  0xc8   :  { %v504_v21 = vand.u32 4294901760, %v503_v7 }
  0xc9   :  { %v116_v60 = vpop.permute.xlu1 %115  ;;  %1549 = vmatprep.subr.bf16.mxu1 %v1960_v57  ;;  %1597 = vmatprep.subr.bf16.mxu0 %v1960_v57  ;;  %v516_v42 = vand.u32 4294901760, %v2026_v45 }
  0xca   :  { %1551 = vmatpush3.bf16.msra.mxu1 %v1960_v57  ;;  %1599 = vmatpush3.bf16.msra.mxu0 %v1960_v57  ;;  %v132_v15 = vmul.f32 %v1908_v59, %v116_v60  ;;  %v191_v59 = vadd.f32 %v183_v29, %v139_v20  ;;  %v2039_v60 = vand.u32 4294901760, %v328_v35  ;;  %v2065_v29 = vand.u32 4294901760, %v337_v39 }
  0xcc   :  { %v140_v61 = vadd.f32 %v132_v15, %v88_v17  ;;  %v2054_v11 = vsub.f32 %v328_v35, %v2039_v60  ;;  %v445_v17 = vsub.f32 %v2022_v40, %v444_v10 }
  0xce   :  { %v168_v6 = vpop.permute.xlu1 %167 }
  0xcf   :  { %v184_v22 = vmul.f32 %v1917_v2, %v168_v6 }
  0xd1   :  { %v192_v63 = vadd.f32 %v184_v22, %v140_v61  ;;  %v454_v22 = vand.u32 4294901760, %v2054_v11 }
  0xd2   :  { %v172_v25 = vpop.permute.xlu1 %171 }
  0xd3   :  { %v185_v24 = vmul.f32 %v1917_v2, %v172_v25  ;;  %v264_v2 = vld [vmem:[%s2182_s3 + $0x30] sm:$0xff]  ;;  %s1734_s3 = smov [#allocation3]  }
  0xd4   :  { %v334_v5 = vsel %vm314_vm0, %v264_v2, 0  ;;  %v2093_v2 = vsub.f32 %v337_v39, %v2065_v29  ;;  %s1272_s2 = sshll.u32 %s1734_s3, 4  ;;  %s1273_s2 = int_to_ptr.vmem [resolvable:$true] %s1272_s2 }
  0xd5   :  { %v193_v33 = vadd.f32 %v185_v24, %v141_v27  ;;  %v497_v27 = vand.u32 4294901760, %v496_v1  ;;  %v2061_v24 = vsub.f32 %v331_v41, %v2043_v4  ;;  %v2063_v54 = vand.u32 4294901760, %v334_v5  ;;  %s1707_s29 = scalar_lea.vmem %s1273_s2, 16  ;;  %s1711_s30 = scalar_lea.vmem %s1273_s2, 32 }
  0xd6   :  { %v1608_v41 = vpack.c.bf16 %v502_v43, %v495_v36  ;;  %v436_v36 = vand.u32 4294901760, %v435_v34  ;;  %p1708_p0 = scmp.ne.s32.totalorder %s1273_s2, %s1707_s29  ;;  %p1712_p1 = scmp.lt.s32.totalorder %s1273_s2, %s1273_s2 }
  0xd7   :  { %v249_v37 = vadd.f32 %v240_v19, %v193_v33  ;;  %v230_v38 = vpop.permute.xlu1 %229  ;;  %v517_v33 = vsub.f32 %v2026_v45, %v516_v42  ;;  %v523_v19 = vand.u32 4294901760, %v2049_v8  ;;  %v464_v61 = vand.u32 4294901760, %v2061_v24  ;;  %p1713_p2 = scmp.lt.s32.totalorder %s1711_s30, %s1707_s29 }
  0xd8   :  { %v247_v46 = vadd.f32 %v230_v38, %v191_v59  ;;  %v510_v38 = vsub.f32 %v2036_v55, %v509_v9 }
  0xd9   :  { %v257_v44 = vmax.f32 %v249_v37, 0.0  ;;  %v465_v39 = vsub.f32 %v2061_v24, %v464_v61  ;;  %p1714_p3 = por %p1713_p2, %p1712_p1 }
  0xda   :  { %v255_v49 = vmax.f32 %v247_v46, 0.0  ;;  %v2090_v46 = vsub.f32 %v334_v5, %v2063_v54  ;;  %v511_v43 = vand.u32 4294901760, %v510_v38  ;;  %v455_v5 = vsub.f32 %v2054_v11, %v454_v22 }
  0xdb   :  { %v235_v51 = vpop.permute.xlu1 %234  ;;  %v361_v12 = vand.u32 4294901760, %v257_v44  ;;  %p1715_p4 = pnand %p1714_p3, %p1708_p0 }
  0xdc   :  { %v355_v47 = vand.u32 4294901760, %v255_v49  ;;  %v248_v6 = vadd.f32 %v235_v51, %v192_v63  ;;  %v446_v63 = vand.u32 4294901760, %v445_v17  ;;  %v524_v51 = vsub.f32 %v2049_v8, %v523_v19 }
  0xdd   :  { %v2081_v59 = vsub.f32 %v257_v44, %v361_v12  ;;  %v518_v44 = vand.u32 4294901760, %v517_v33  ;;  %v466_v33 = vand.u32 4294901760, %v465_v39 }
  0xde   :  { %v2056_v13 = vpack.c.bf16 %v355_v47, %v352_v53  ;;  %v2058_v20 = vsub.f32 %v255_v49, %v355_v47  ;;  %v256_v25 = vmax.f32 %v248_v6, 0.0  ;;  %v1560_v53 = vpack.c.bf16 %v504_v21, %v497_v27 }
  0xdf   :  { %v544_v1 = vand.u32 4294901760, %v2081_v59  ;;  %v474_v47 = vand.u32 4294901760, %v2090_v46  ;;  %v484_v6 = vand.u32 4294901760, %v2093_v2  ;;  %v1564_v7 = vpack.c.bf16 %v518_v44, %v511_v43 }
  0xe0   :  { %v530_v15 = vand.u32 4294901760, %v2058_v20  ;;  %v358_v18 = vand.u32 4294901760, %v256_v25  ;;  %1553 = vmatprep.subr.bf16.mxu1 %v2056_v13  ;;  %1601 = vmatprep.subr.bf16.mxu0 %v2056_v13 }
  0xe1   :  { %1555 = vmatpush3.bf16.msra.mxu1 %v2056_v13  ;;  %1603 = vmatpush3.bf16.msra.mxu0 %v2056_v13  ;;  %v545_v21 = vsub.f32 %v2081_v59, %v544_v1  ;;  %v485_v17 = vsub.f32 %v2093_v2, %v484_v6 }
  0xe2   :  { %v2083_v35 = vpack.c.bf16 %v361_v12, %v358_v18  ;;  %v2085_v37 = vsub.f32 %v256_v25, %v358_v18  ;;  %v531_v49 = vsub.f32 %v2058_v20, %v530_v15  ;;  %v1612_v12 = vpack.c.bf16 %v516_v42, %v509_v9 }
  0xe3   :  { %v525_v18 = vand.u32 4294901760, %v524_v51  ;;  %v1616_v9 = vpack.c.bf16 %v530_v15, %v523_v19  ;;  %v546_v38 = vand.u32 4294901760, %v545_v21  ;;  %v486_v44 = vand.u32 4294901760, %v485_v17 }
  0xe4   :  { %v537_v50 = vand.u32 4294901760, %v2085_v37  ;;  %1557 = vmatprep.subr.bf16.mxu1 %v2083_v35  ;;  %1605 = vmatprep.subr.bf16.mxu0 %v2083_v35  ;;  %v532_v25 = vand.u32 4294901760, %v531_v49  ;;  %v1580_v15 = vpack.c.bf16 %v2026_v45, %v2036_v55 }
  0xe5   :  { %1559 = vmatpush3.bf16.msra.mxu1 %v2083_v35  ;;  %1607 = vmatpush3.bf16.msra.mxu0 %v2083_v35 }
  0xe6   :  { %1561 = vmatprep.subr.bf16.mxu1 %v1560_v53  ;;  %1609 = vmatprep.subr.bf16.mxu0 %v1608_v41  ;;  %v538_v27 = vsub.f32 %v2085_v37, %v537_v50  ;;  %v1568_v42 = vpack.c.bf16 %v532_v25, %v525_v18 }
  0xe8   :  { %1393 = vmatmul.mubr.f32.vlgmr.msra.gmra.mrb[0].mxu1 %v426_v0  ;;  %1477 = vmatmul.mubr.f32.vlgmr.msra.gmra.mrb[0].mxu0 %v424_v14  ;;  %v456_v0 = vand.u32 4294901760, %v455_v5  ;;  %v475_v14 = vsub.f32 %v2090_v46, %v474_v47  ;;  %v539_v34 = vand.u32 4294901760, %v538_v27 }
  0xe9   :  { %1563 = vmatpush3.bf16.msra.mxu1 %v1560_v53  ;;  %1611 = vmatpush3.bf16.msra.mxu0 %v1608_v41  ;;  %v1620_v53 = vpack.c.bf16 %v544_v1, %v537_v50 }
  0xea   :  { %1565 = vmatprep.subr.bf16.mxu1 %v1564_v7  ;;  %1613 = vmatprep.subr.bf16.mxu0 %v1612_v12  ;;  %v1572_v41 = vpack.c.bf16 %v546_v38, %v539_v34 }
  0xeb   :  { %1395 = vmatprep.mubr.f32.mxu1 %v436_v36  ;;  %1479 = vmatprep.mubr.f32.mxu0 %v434_v58  ;;  %v476_v58 = vand.u32 4294901760, %v475_v14 }
  0xec   :  { %1396 = vmatmul.mubr.f32.gmra.mrb[2].mxu1 %v446_v63  ;;  %1480 = vmatmul.mubr.f32.gmra.mrb[2].mxu0 %v444_v10  ;;  %v1576_v10 = vpack.c.bf16 %v2003_v30, %v1990_v26  ;;  %v1584_v26 = vpack.c.bf16 %v2058_v20, %v2049_v8 }
  0xed   :  { %1567 = vmatpush3.bf16.msra.mxu1 %v1564_v7  ;;  %1615 = vmatpush3.bf16.msra.mxu0 %v1612_v12 }
  0xee   :  { %1569 = vmatprep.subr.bf16.mxu1 %v1568_v42  ;;  %1617 = vmatprep.subr.bf16.mxu0 %v1616_v9 }
  0xef   :  { %1398 = vmatprep.mubr.f32.mxu1 %v456_v0  ;;  %1482 = vmatprep.mubr.f32.mxu0 %v454_v22 }
  0xf0   :  { %1399 = vmatmul.mubr.f32.gmra.mrb[4].mxu1 %v466_v33  ;;  %1483 = vmatmul.mubr.f32.gmra.mrb[4].mxu0 %v464_v61 }
  0xf1   :  { %1571 = vmatpush3.bf16.msra.mxu1 %v1568_v42  ;;  %1619 = vmatpush3.bf16.msra.mxu0 %v1616_v9 }
  0xf2   :  { %1573 = vmatprep.subr.bf16.mxu1 %v1572_v41  ;;  %1621 = vmatprep.subr.bf16.mxu0 %v1620_v53 }
  0xf3   :  { %1401 = vmatprep.mubr.f32.mxu1 %v476_v58  ;;  %1485 = vmatprep.mubr.f32.mxu0 %v474_v47 }
  0xf4   :  { %1402 = vmatmul.mubr.f32.gmra.mrb[6].mxu1 %v486_v44  ;;  %1486 = vmatmul.mubr.f32.gmra.mrb[6].mxu0 %v484_v6 }
  0xf5   :  { %1575 = vmatpush3.bf16.msra.mxu1 %v1572_v41  ;;  %1623 = vmatpush3.bf16.msra.mxu0 %v1620_v53 }
  0xf6   :  { %1577 = vmatprep.subr.bf16.mxu1 %v1576_v10  ;;  %1625 = vmatprep.subr.bf16.mxu0 %v1936_v23 }
  0xf7   :  { %1420 = vmatprep.mubr.f32.mxu1 %v1867_v31  ;;  %1504 = vmatprep.mubr.f32.mxu0 %v1867_v31 }
  0xf8   :  { %1421 = vmatmul.mubr.f32.vlgmr.msra.gmra.mrb[0].mxu1 %v1965_v62  ;;  %1505 = vmatmul.mubr.f32.vlgmr.msra.gmra.mrb[0].mxu0 %v1965_v62 }
  0xf9   :  { %1579 = vmatpush3.bf16.msra.mxu1 %v1576_v10  ;;  %1627 = vmatpush3.bf16.msra.mxu0 %v1936_v23  ;;  %v1588_v23 = vpack.c.bf16 %v2081_v59, %v2085_v37 }
  0xfa   :  { %1581 = vmatprep.subr.bf16.mxu1 %v1580_v15  ;;  %1629 = vmatprep.subr.bf16.mxu0 %v1960_v57 }
  0xfb   :  { %1423 = vmatprep.mubr.f32.mxu1 %v1986_v16  ;;  %1507 = vmatprep.mubr.f32.mxu0 %v1986_v16 }
  0xfc   :  { %1424 = vmatmul.mubr.f32.gmra.mrb[2].mxu1 %v1993_v28  ;;  %1508 = vmatmul.mubr.f32.gmra.mrb[2].mxu0 %v1993_v28 }
  0xfd   :  { %1583 = vmatpush3.bf16.msra.mxu1 %v1580_v15  ;;  %1631 = vmatpush3.bf16.msra.mxu0 %v1960_v57 }
  0xfe   :  { %1585 = vmatprep.subr.bf16.mxu1 %v1584_v26  ;;  %1633 = vmatprep.subr.bf16.mxu0 %v2056_v13 }
  0xff   :  { %1426 = vmatprep.mubr.f32.mxu1 %v2039_v60  ;;  %1510 = vmatprep.mubr.f32.mxu0 %v2039_v60 }
 0x100   :  { %1427 = vmatmul.mubr.f32.gmra.mrb[4].mxu1 %v2043_v4  ;;  %1511 = vmatmul.mubr.f32.gmra.mrb[4].mxu0 %v2043_v4 }
 0x101   :  { %1587 = vmatpush3.bf16.msra.mxu1 %v1584_v26  ;;  %1635 = vmatpush3.bf16.msra.mxu0 %v2056_v13 }
 0x102   :  { %1589 = vmatprep.subr.bf16.mxu1 %v1588_v23  ;;  %1637 = vmatprep.subr.bf16.mxu0 %v2083_v35 }
 0x103   :  { %1429 = vmatprep.mubr.f32.mxu1 %v2063_v54  ;;  %1513 = vmatprep.mubr.f32.mxu0 %v2063_v54 }
 0x104   :  { %1430 = vmatmul.mubr.f32.gmra.mrb[6].mxu1 %v2065_v29  ;;  %1514 = vmatmul.mubr.f32.gmra.mrb[6].mxu0 %v2065_v29 }
 0x105   :  { %1591 = vmatpush3.bf16.msra.mxu1 %v1588_v23  ;;  %1639 = vmatpush3.bf16.msra.mxu0 %v2083_v35 }
 0x106   :  { %1448 = vmatprep.mubr.f32.mxu1 %v1870_v32  ;;  %1532 = vmatprep.mubr.f32.mxu0 %v1867_v31  ;;  %v277_v31 = vpop.permute.xlu1 %276  ;;  %v282_v32 = vpop.permute.xlu0 %281 }
 0x108   :  { %1449 = vmatmul.mubr.f32.vlgmr.msra.gmra.mrb[0].mxu1 %v1973_v3  ;;  %1533 = vmatmul.mubr.f32.vlgmr.msra.gmra.mrb[0].mxu0 %v1965_v62 }
 0x109   :  { %1451 = vmatprep.mubr.f32.mxu1 %v2015_v48  ;;  %1535 = vmatprep.mubr.f32.mxu0 %v1986_v16 }
 0x10a   :  { %v287_v57 = vpop.permute.xlu1 %286  ;;  %v292_v62 = vpop.permute.xlu0 %291 }
 0x10c   :  { %1452 = vmatmul.mubr.f32.gmra.mrb[2].mxu1 %v2022_v40  ;;  %1536 = vmatmul.mubr.f32.gmra.mrb[2].mxu0 %v1993_v28 }
 0x10d   :  { %1454 = vmatprep.mubr.f32.mxu1 %v2054_v11  ;;  %1538 = vmatprep.mubr.f32.mxu0 %v2039_v60 }
 0x10e   :  { %v297_v3 = vpop.permute.xlu1 %296  ;;  %v1196_v16 = vpop.permute.xlu0 %1195 }
 0x110   :  { %1455 = vmatmul.mubr.f32.gmra.mrb[4].mxu1 %v2061_v24  ;;  %1539 = vmatmul.mubr.f32.gmra.mrb[4].mxu0 %v2043_v4 }
 0x111   :  { %1457 = vmatprep.mubr.f32.mxu1 %v2090_v46  ;;  %1541 = vmatprep.mubr.f32.mxu0 %v2063_v54 }
 0x112   :  { %v1201_v28 = vpop.permute.xlu1 %1200  ;;  %v302_v30 = vpop.permute.xlu0 %301 }
 0x114   :  { %1458 = vmatmul.mubr.f32.gmra.mrb[6].mxu1 %v2093_v2  ;;  %1542 = vmatmul.mubr.f32.gmra.mrb[6].mxu0 %v2065_v29 }
 0x116   :  { %v1206_v48 = vpop.permute.xlu1 %1205  ;;  %v307_v40 = vpop.permute.xlu0 %306 }
 0x11a   :  { %v1211_v13 = vpop.permute.xlu1 %1210  ;;  %v312_v46 = vpop.permute.xlu0 %311 }
 0x11e   :  { %v1216_v12 = vpop.permute.xlu1 %1215  ;;  %v1221_v41 = vpop.permute.xlu0 %1220 }
 0x1db   :  { %v1450_v45 = vpop.f32.mrb[0].mxu1  ;;  %v1534_v55 = vpop.f32.mrb[0].mxu0 }
 0x1dc   :  { %v1640_v60 = vadd.f32 %v1450_v45, %v282_v32  ;;  %v729_v4 = vpop.f32.mrb[1].mxu1  ;;  %v1131_v8 = vpop.f32.mrb[1].mxu0 }
 0x1dd   :  { %v1642_v11 = vadd.f32 %v729_v4, %v277_v31 }
 0x1de   :  { %v1641_v20 = vadd.f32 %v1640_v60, %v1534_v55 }
 0x1df   :  { %v1643_v24 = vadd.f32 %v1642_v11, %v1131_v8  ;;  %v1453_v54 = vpop.f32.mrb[2].mxu1  ;;  %v1537_v29 = vpop.f32.mrb[2].mxu0 }
 0x1e0   :  { %v1178_v19 = vmax.f32 %v1641_v20, 0.0  ;;  %v1644_v22 = vadd.f32 %v1453_v54, %v292_v62  ;;  %v743_v59 = vpop.f32.mrb[3].mxu1  ;;  %v1143_v35 = vpop.f32.mrb[3].mxu0 }
 0x1e1   :  { %v1177_v37 = vmax.f32 %v1643_v24, 0.0  ;;  %v1646_v61 = vadd.f32 %v743_v59, %v287_v57  ;;  %v1226_v57 = vpop.permute.xlu1 %1225 }
 0x1e2   :  { %v1234_v2 = vmul.f32 %v1201_v28, %v1178_v19  ;;  %v1645_v50 = vadd.f32 %v1644_v22, %v1537_v29 }
 0x1e3   :  { %v1233_v49 = vmul.f32 %v1196_v16, %v1177_v37  ;;  %v1647_v36 = vadd.f32 %v1646_v61, %v1143_v35  ;;  %v1456_v43 = vpop.f32.mrb[4].mxu1  ;;  %v1540_v63 = vpop.f32.mrb[4].mxu0 }
 0x1e4   :  { %v1180_v51 = vmax.f32 %v1645_v50, 0.0  ;;  %v1648_v1 = vadd.f32 %v1456_v43, %v302_v30  ;;  %v757_v5 = vpop.f32.mrb[5].mxu1  ;;  %v1155_v39 = vpop.f32.mrb[5].mxu0 }
 0x1e5   :  { %v1241_v47 = vadd.f32 %v1234_v2, %v1233_v49  ;;  %v1179_v6 = vmax.f32 %v1647_v36, 0.0  ;;  %v1650_v7 = vadd.f32 %v757_v5, %v297_v3  ;;  %v1231_v16 = vpop.permute.xlu0 %1230  ;;  %v1258_v4 = vpop.permute.xlu1 %1257 }
 0x1e6   :  { %v1649_v25 = vadd.f32 %v1648_v1, %v1540_v63  ;;  %v1236_v33 = vmul.f32 %v1211_v13, %v1180_v51  ;;  %v1263_v11 = vrot.slane %v1258_v4, %v80_v56 }
 0x1e7   :  { %v1235_v27 = vmul.f32 %v1206_v48, %v1179_v6  ;;  %v1651_v18 = vadd.f32 %v1650_v7, %v1155_v39  ;;  %v1459_v21 = vpop.f32.mrb[6].mxu1  ;;  %v1543_v0 = vpop.f32.mrb[6].mxu0 }
 0x1e8   :  { %v1652_v14 = vadd.f32 %v1459_v21, %v312_v46  ;;  %v771_v42 = vpop.f32.mrb[7].mxu1  ;;  %v1167_v9 = vpop.f32.mrb[7].mxu0  ;;  %v1182_v17 = vmax.f32 %v1649_v25, 0.0 }
 0x1e9   :  { %v1242_v34 = vadd.f32 %v1241_v47, %v1235_v27  ;;  %v1181_v38 = vmax.f32 %v1651_v18, 0.0  ;;  %v1654_v58 = vadd.f32 %v771_v42, %v307_v40 }
 0x1ea   :  { %v1653_v53 = vadd.f32 %v1652_v14, %v1543_v0  ;;  %v1238_v26 = vmul.f32 %v1221_v41, %v1182_v17 }
 0x1eb   :  { %v1237_v44 = vmul.f32 %v1216_v12, %v1181_v38  ;;  %v1243_v10 = vadd.f32 %v1242_v34, %v1236_v33  ;;  %v1655_v15 = vadd.f32 %v1654_v58, %v1167_v9 }
 0x1ec   :  { %v1184_v31 = vmax.f32 %v1653_v53, 0.0 }
 0x1ed   :  { %v1244_v23 = vadd.f32 %v1243_v10, %v1237_v44  ;;  %v1183_v32 = vmax.f32 %v1655_v15, 0.0 }
 0x1ee   :  { %v1240_v28 = vmul.f32 %v1231_v16, %v1184_v31 }
 0x1ef   :  { %v1239_v62 = vmul.f32 %v1226_v57, %v1183_v32  ;;  %v1245_v3 = vadd.f32 %v1244_v23, %v1238_v26 }
 0x1f1   :  { %v1246_v30 = vadd.f32 %v1245_v3, %v1239_v62 }
 0x1f3   :  { %v1247_v48 = vadd.f32 %v1246_v30, %v1240_v28 }
 0x1f5   :  { %v1248_v45 = vrot.slane %v1247_v48, 4 }
 0x1f7   :  { %v1249_v55 = vadd.f32 %v1248_v45, %v1247_v48 }
 0x1f9   :  { %v1250_v60 = vrot.slane %v1249_v55, 2 }
 0x1fb   :  { %v1251_v40 = vadd.f32 %v1250_v60, %v1249_v55 }
 0x1fd   :  { %v1252_v8 = vrot.slane %v1251_v40, 1 }
 0x1ff   :  { %v1253_v13 = vadd.f32 %v1252_v8, %v1251_v40 }
 0x201   :  { %v1264_v20 = vadd.f32 %v1263_v11, %v1253_v13 }
 0x203   :  { %1265 = vst [vmem:[#allocation3] sm:$0x1] %v1264_v20 }
 0x204   :  { %1718 = shalt.err (!%p1715_p4)
}
 0x205   :  { %s1719_s9 = scalar_lea.hbm %s2186_s7, 16 }
 0x206   :  { %p1720_p5 = scmp.ne.s32.totalorder %s2186_s7, %s1719_s9  ;;  %p1723_p6 = scmp.lt.u32.totalorder %s1719_s9, %s2186_s7 }
 0x208   :  { %p1725_p7 = pnand %p1723_p6, %p1720_p5 }
 0x20a   :  { %1728 = shalt.err (!%p1725_p7)
}
 0x20b   :  { %1275 = dma.vmem_to_hbm [thread:$0]  %s1273_s2, 16, %s2186_s7, [#allocation4]  }
 0x20c   :  { %1729 = dma.done.wait [#allocation4], 16  }
 0x20d   :  { %1730 = vsyncadd [#allocation4], 4294967280 }
 0x20e   :  { %1279 = vsyncpa [#allocation4], 1 }

</bundles_post_ra>
